<compile_context>
chip_gen: v5e
topology: v5e:2x2
jax: 0.10.0
libtpu: 0.0.40
codegen_flags: <defaults>
</compile_context>

<pallas_src>
import functools

import jax
import jax.numpy as jnp
from jax.experimental import pallas as pl
from jax.experimental.pallas import tpu as pltpu


def _round_up(n, m):
    return ((n + m - 1) // m) * m


def _discriminator_kernel(x_ref, w1_ref, b1_ref, w2_ref, b2_ref, w3_ref,
                          b3_ref, o_ref, *, matmul_dtype):
    x = x_ref[...]                                   # (tb, D) f32
    w1 = w1_ref[...]                                 # (D, H)
    w2 = w2_ref[...]                                 # (H, H)
    if matmul_dtype != jnp.float32:
        x = x.astype(matmul_dtype)
        w1 = w1.astype(matmul_dtype)
        w2 = w2.astype(matmul_dtype)

    # Layer 1: MXU matmul, f32 accumulation; bias + ReLU in f32 on the VPU.
    h1 = jnp.dot(x, w1, preferred_element_type=jnp.float32) + b1_ref[...]
    h1 = jnp.maximum(h1, 0.0)
    h1m = h1.astype(matmul_dtype) if matmul_dtype != jnp.float32 else h1

    # Layer 2.
    h2 = jnp.dot(h1m, w2, preferred_element_type=jnp.float32) + b2_ref[...]
    h2 = jnp.maximum(h2, 0.0)

    # Layer 3: Linear(H, 1).  N=1 would waste the MXU, so do a VPU multiply by
    # the (1, H) weight row + lane reduction (XLU) instead, add scalar bias
    # from SMEM.
    logits = jnp.sum(h2 * w3_ref[...], axis=-1, keepdims=True) + b3_ref[0]
    o_ref[...] = logits


def discriminator_forward(x, params, *, batch_tile=None,
                          matmul_dtype=jnp.float32):
    """Pallas forward of the Discriminator MLP (dist=None path).

    x: (B, input_net_dim) float32
    params: dict with w1 (D,H), b1 (1,H), w2 (H,H), b2 (1,H), w3 (H,1), b3 (1,1)
    returns: (B, 1) float32 logits
    """
    x = jnp.asarray(x, jnp.float32)
    B, D = x.shape
    H = params["w1"].shape[1]

    if batch_tile is None:
        # Big tiles amortize the ~0.35us per-grid-step overhead; cap at 512 so
        # large batches still yield >=2 "parallel" steps for v7x's 2 TCs.
        batch_tile = min(_round_up(B, 8), 512)
    batch_tile = _round_up(max(int(batch_tile), 8), 8)

    # Pad ragged batches up to the tile; slice the output back afterwards.
    Bp = _round_up(B, batch_tile)
    if Bp != B:
        x = jnp.pad(x, ((0, Bp - B), (0, 0)))
    grid = (Bp // batch_tile,)

    # Final-layer weight as a lane-dense (1, H) row; bias as a scalar in SMEM.
    w3_row = params["w3"].reshape(1, H).astype(jnp.float32)
    b3_s = params["b3"].reshape(1).astype(jnp.float32)

    # Raise the scoped VMEM limit only if the (double-buffered) footprint
    # would be tight under the default (16 MiB v5e / 32 MiB v6e,v7x).
    itemsize = 4
    vmem_est = 2 * itemsize * (batch_tile * D + D * H + H * H + 3 * H
                               + batch_tile * 128)
    cp_kwargs = dict(dimension_semantics=("parallel",))
    if vmem_est > (12 << 20):
        cp_kwargs["vmem_limit_bytes"] = min(int(vmem_est * 2), 100 << 20)
    # TODO(synk): if hidden_dim ever grows to >=2048 f32 on v7x (64 MiB VMEM),
    # tile the H reduction axis (trailing "arbitrary" grid dim + f32 VMEM
    # accumulator) or single-buffer w2 instead of holding it whole.

    kernel = functools.partial(_discriminator_kernel,
                               matmul_dtype=matmul_dtype)

    out = pl.pallas_call(
        kernel,
        out_shape=jax.ShapeDtypeStruct((Bp, 1), jnp.float32),
        grid_spec=pltpu.PrefetchScalarGridSpec(
            num_scalar_prefetch=0,
            grid=grid,
            in_specs=[
                pl.BlockSpec((batch_tile, D), lambda i: (i, 0)),   # x tile
                pl.BlockSpec((D, H), lambda i: (0, 0)),            # w1 (whole)
                pl.BlockSpec((1, H), lambda i: (0, 0)),            # b1
                pl.BlockSpec((H, H), lambda i: (0, 0)),            # w2 (whole)
                pl.BlockSpec((1, H), lambda i: (0, 0)),            # b2
                pl.BlockSpec((1, H), lambda i: (0, 0)),            # w3 row
                pl.BlockSpec(memory_space=pltpu.MemorySpace.SMEM), # b3 scalar
            ],
            out_specs=pl.BlockSpec((batch_tile, 1), lambda i: (i, 0)),
        ),
        compiler_params=pltpu.CompilerParams(**cp_kwargs),
    )(x, params["w1"], params["b1"], params["w2"], params["b2"], w3_row, b3_s)

    return out[:B]


def init_params(key, input_net_dim, hidden_dim):
    """Deterministic synthetic init (stand-in for utils.weight_init)."""
    k1, k2, k3 = jax.random.split(key, 3)
    w1 = jax.random.normal(k1, (input_net_dim, hidden_dim), jnp.float32)
    w1 = w1 * (1.0 / jnp.sqrt(jnp.float32(input_net_dim)))
    w2 = jax.random.normal(k2, (hidden_dim, hidden_dim), jnp.float32)
    w2 = w2 * (1.0 / jnp.sqrt(jnp.float32(hidden_dim)))
    w3 = jax.random.normal(k3, (hidden_dim, 1), jnp.float32)
    w3 = w3 * (1.0 / jnp.sqrt(jnp.float32(hidden_dim)))
    return {
        "w1": w1, "b1": jnp.zeros((1, hidden_dim), jnp.float32),
        "w2": w2, "b2": jnp.zeros((1, hidden_dim), jnp.float32),
        "w3": w3, "b3": jnp.zeros((1, 1), jnp.float32),
    }


def reference_forward(x, p):
    h1 = jnp.maximum(x @ p["w1"] + p["b1"], 0.0)
    h2 = jnp.maximum(h1 @ p["w2"] + p["b2"], 0.0)
    return h2 @ p["w3"] + p["b3"]


if __name__ == "__main__":
    # Small shapes consistent with the module: transition is (B, input_net_dim).
    batch = 16
    input_net_dim = 32
    hidden_dim = 32

    key = jax.random.PRNGKey(0)
    kx, kp = jax.random.split(key)
    x = jax.random.normal(kx, (batch, input_net_dim), jnp.float32)
    params = init_params(kp, input_net_dim, hidden_dim)

    # f32 path: single grid step for the tiny demo batch, exact vs reference.
    d = jax.block_until_ready(discriminator_forward(x, params))
    d_ref = reference_forward(x, params)
    assert d.shape == (batch, 1)
    assert jnp.allclose(d, d_ref, atol=1e-4, rtol=1e-4), "f32 mismatch"

    # bf16-MXU path (f32 accumulation); looser tolerance expected.
    d_bf16 = jax.block_until_ready(
        discriminator_forward(x, params, matmul_dtype=jnp.bfloat16))
    assert d_bf16.shape == (batch, 1)
    assert jnp.allclose(d_bf16, d_ref, atol=5e-2, rtol=5e-2), "bf16 mismatch"

    # Ragged, larger batch: exercises batch padding + multi-step parallel grid.
    x2 = jax.random.normal(jax.random.PRNGKey(1), (300, input_net_dim),
                           jnp.float32)
    d2 = jax.block_until_ready(
        discriminator_forward(x2, params, batch_tile=128))
    d2_ref = reference_forward(x2, params)
    assert d2.shape == (300, 1)
    assert jnp.allclose(d2, d2_ref, atol=1e-4, rtol=1e-4), "ragged mismatch"

    # TODO(synk): dist == 'binary' wraps logits in torch.distributions
    # Bernoulli/Independent (host-side glue, no Pallas equivalent) and
    # spectral_norm is a training-time weight reparameterization — the kernel
    # returns the raw logits `d` (dist=None path).

    print("KERNEL_OK")
</pallas_src>

<mosaic_0001>
module attributes {stable_mosaic.version = 11 : i64} {
  func.func @_discriminator_kernel(%arg0: i32, %arg1: memref<16x32xf32, #tpu.memory_space<vmem>>, %arg2: memref<32x32xf32, #tpu.memory_space<vmem>>, %arg3: memref<1x32xf32, #tpu.memory_space<vmem>>, %arg4: memref<32x32xf32, #tpu.memory_space<vmem>>, %arg5: memref<1x32xf32, #tpu.memory_space<vmem>>, %arg6: memref<1x32xf32, #tpu.memory_space<vmem>>, %arg7: memref<1xf32, #tpu.memory_space<smem>>, %arg8: memref<16x1xf32, #tpu.memory_space<vmem>>) attributes {dimension_semantics = [#tpu.dimension_semantics<parallel>], iteration_bounds = array<i64: 1>, scalar_prefetch = 0 : i64, scratch_operands = 0 : i64, tpu.core_type = #tpu.core_type<tc>, window_params = [{transform_indices = @transform_0, window_bounds = array<i64: 16, 32>}, {pipeline_mode = #tpu.pipeline_mode<synchronous>, transform_indices = @transform_1, window_bounds = array<i64: 32, 32>}, {pipeline_mode = #tpu.pipeline_mode<synchronous>, transform_indices = @transform_2, window_bounds = array<i64: 1, 32>}, {pipeline_mode = #tpu.pipeline_mode<synchronous>, transform_indices = @transform_3, window_bounds = array<i64: 32, 32>}, {pipeline_mode = #tpu.pipeline_mode<synchronous>, transform_indices = @transform_4, window_bounds = array<i64: 1, 32>}, {pipeline_mode = #tpu.pipeline_mode<synchronous>, transform_indices = @transform_5, window_bounds = array<i64: 1, 32>}, {transform_indices = @transform_6, window_bounds = array<i64: 1>}, {transform_indices = @transform_7, window_bounds = array<i64: 16, 1>}]} {
    %c0 = arith.constant 0 : index
    %c0_0 = arith.constant 0 : index
    %0 = vector.load %arg1[%c0, %c0_0] : memref<16x32xf32, #tpu.memory_space<vmem>>, vector<16x32xf32>
    %c0_1 = arith.constant 0 : index
    %c0_2 = arith.constant 0 : index
    %1 = vector.load %arg2[%c0_1, %c0_2] : memref<32x32xf32, #tpu.memory_space<vmem>>, vector<32x32xf32>
    %c0_3 = arith.constant 0 : index
    %c0_4 = arith.constant 0 : index
    %2 = vector.load %arg4[%c0_3, %c0_4] : memref<32x32xf32, #tpu.memory_space<vmem>>, vector<32x32xf32>
    %cst = arith.constant dense<0.000000e+00> : vector<16x32xf32>
    %3 = tpu.matmul %0, %1, %cst {dimension_numbers = #tpu.dot_dimension_numbers<[1], [0], [0], [1], [0, 0, 1, 1], [], []>} : vector<16x32xf32>, vector<32x32xf32>, vector<16x32xf32> -> vector<16x32xf32>
    %c0_5 = arith.constant 0 : index
    %c0_6 = arith.constant 0 : index
    %4 = vector.load %arg3[%c0_5, %c0_6] : memref<1x32xf32, #tpu.memory_space<vmem>>, vector<1x32xf32>
    %5 = vector.broadcast %4 : vector<1x32xf32> to vector<16x32xf32>
    %6 = arith.addf %3, %5 : vector<16x32xf32>
    %cst_7 = arith.constant 0.000000e+00 : f32
    %7 = vector.broadcast %cst_7 : f32 to vector<16x32xf32>
    %8 = arith.maximumf %6, %7 : vector<16x32xf32>
    %cst_8 = arith.constant dense<0.000000e+00> : vector<16x32xf32>
    %9 = tpu.matmul %8, %2, %cst_8 {dimension_numbers = #tpu.dot_dimension_numbers<[1], [0], [0], [1], [0, 0, 1, 1], [], []>} : vector<16x32xf32>, vector<32x32xf32>, vector<16x32xf32> -> vector<16x32xf32>
    %c0_9 = arith.constant 0 : index
    %c0_10 = arith.constant 0 : index
    %10 = vector.load %arg5[%c0_9, %c0_10] : memref<1x32xf32, #tpu.memory_space<vmem>>, vector<1x32xf32>
    %11 = vector.broadcast %10 : vector<1x32xf32> to vector<16x32xf32>
    %12 = arith.addf %9, %11 : vector<16x32xf32>
    %cst_11 = arith.constant 0.000000e+00 : f32
    %13 = vector.broadcast %cst_11 : f32 to vector<16x32xf32>
    %14 = arith.maximumf %12, %13 : vector<16x32xf32>
    %c0_12 = arith.constant 0 : index
    %c0_13 = arith.constant 0 : index
    %15 = vector.load %arg6[%c0_12, %c0_13] : memref<1x32xf32, #tpu.memory_space<vmem>>, vector<1x32xf32>
    %16 = vector.broadcast %15 : vector<1x32xf32> to vector<16x32xf32>
    %17 = arith.mulf %14, %16 : vector<16x32xf32>
    %cst_14 = arith.constant dense<0.000000e+00> : vector<16xf32>
    %18 = vector.multi_reduction <add>, %17, %cst_14 [1] : vector<16x32xf32> to vector<16xf32>
    %19 = vector.shape_cast %18 : vector<16xf32> to vector<16x1xf32>
    %c0_15 = arith.constant 0 : index
    %20 = memref.load %arg7[%c0_15] : memref<1xf32, #tpu.memory_space<smem>>
    %21 = vector.broadcast %20 : f32 to vector<16x1xf32>
    %22 = arith.addf %19, %21 : vector<16x1xf32>
    %c0_16 = arith.constant 0 : index
    %c0_17 = arith.constant 0 : index
    %23 = vector.load %arg8[%c0_16, %c0_17] : memref<16x1xf32, #tpu.memory_space<vmem>>, vector<16x1xf32>
    tpu.vector_store %arg8[%c0_16, %c0_17], %22 {strides = array<i32>} : memref<16x1xf32, #tpu.memory_space<vmem>>, vector<16x1xf32>,
    return
  }
  func.func @transform_0(%arg0: i32) -> (i32, i32) {
    %c0_i32 = arith.constant 0 : i32
    %c0_i32_0 = arith.constant 0 : i32
    return %arg0, %c0_i32 : i32, i32
  }
  func.func @transform_1(%arg0: i32) -> (i32, i32) {
    %c0_i32 = arith.constant 0 : i32
    %c0_i32_0 = arith.constant 0 : i32
    %c0_i32_1 = arith.constant 0 : i32
    return %c0_i32, %c0_i32_0 : i32, i32
  }
  func.func @transform_2(%arg0: i32) -> (i32, i32) {
    %c0_i32 = arith.constant 0 : i32
    %c0_i32_0 = arith.constant 0 : i32
    %c0_i32_1 = arith.constant 0 : i32
    return %c0_i32, %c0_i32_0 : i32, i32
  }
  func.func @transform_3(%arg0: i32) -> (i32, i32) {
    %c0_i32 = arith.constant 0 : i32
    %c0_i32_0 = arith.constant 0 : i32
    %c0_i32_1 = arith.constant 0 : i32
    return %c0_i32, %c0_i32_0 : i32, i32
  }
  func.func @transform_4(%arg0: i32) -> (i32, i32) {
    %c0_i32 = arith.constant 0 : i32
    %c0_i32_0 = arith.constant 0 : i32
    %c0_i32_1 = arith.constant 0 : i32
    return %c0_i32, %c0_i32_0 : i32, i32
  }
  func.func @transform_5(%arg0: i32) -> (i32, i32) {
    %c0_i32 = arith.constant 0 : i32
    %c0_i32_0 = arith.constant 0 : i32
    %c0_i32_1 = arith.constant 0 : i32
    return %c0_i32, %c0_i32_0 : i32, i32
  }
  func.func @transform_6(%arg0: i32) -> i32 {
    %c0_i32 = arith.constant 0 : i32
    %c0_i32_0 = arith.constant 0 : i32
    return %c0_i32 : i32
  }
  func.func @transform_7(%arg0: i32) -> (i32, i32) {
    %c0_i32 = arith.constant 0 : i32
    %c0_i32_0 = arith.constant 0 : i32
    return %arg0, %c0_i32 : i32, i32
  }
}

</mosaic_0001>

<bundles_post_ra>
// kernel: tpu_custom_call.1
= control target key start
LH: loop header
LB: loop body
LE: loop exit
PB: predicated region body
PF: predicated region fallthrough
CT: control target
= control target key end

     0   :  { %13 = vsyncpa [#allocation4], 0  ;;  %s354_s0 = inlined_call_operand.hbm [shape: f32[16,32], index: 0, kind: input, shape index: {}]   ;;  %s355_s1 = inlined_call_operand.hbm [shape: f32[32,32], index: 1, kind: input, shape index: {}]   ;;  %s356_s2 = inlined_call_operand.vmem [shape: f32[1,32], index: 2, kind: input, shape index: {}]   ;;  %s357_s3 = inlined_call_operand.hbm [shape: f32[32,32], index: 3, kind: input, shape index: {}]   ;;  %s358_s4 = inlined_call_operand.vmem [shape: f32[1,32], index: 4, kind: input, shape index: {}]   ;;  %s359_s5 = inlined_call_operand.vmem [shape: f32[1,32], index: 5, kind: input, shape index: {}]   ;;  %s360_s6 = inlined_call_operand.<no memory space> [shape: f32[1], index: 6, kind: input, shape index: {}]   ;;  %s361_s7 = inlined_call_operand.vmem [shape: f32[16,1], index: 7, kind: output, shape index: {}]  }
   0x1   :  { %14 = vsyncpa [#allocation6], 0  ;;  %s32_s26 = sshll.u32 %s355_s1, 4  ;;  %s276_s27 = smov [#allocation5]   ;;  %s33_s26 = int_to_ptr.hbm [resolvable:$true] %s32_s26 }
   0x2   :  { %s34_s28 = sshll.u32 %s276_s27, 4  ;;  %s19_s8 = sshll.u32 %s354_s0, 4  ;;  %s35_s28 = int_to_ptr.vmem [resolvable:$true] %s34_s28  ;;  %s20_s8 = int_to_ptr.hbm [resolvable:$true] %s19_s8 }
   0x3   :  { %s277_s9 = smov 128   ;;  %s278_s10 = smov 8  }
   0x4   :  { %40 = dma.hbm_to_vmem [thread:$0]  %s33_s26, 512, %s35_s28, [#allocation6], %s277_s9, %s277_s9, %s278_s10  }
   0x5   :  { %s279_s11 = smov [#allocation3]   ;;  %s47_s15 = sshll.u32 %s357_s3, 4  ;;  %s48_s15 = int_to_ptr.hbm [resolvable:$true] %s47_s15 }
   0x6   :  { %s21_s12 = sshll.u32 %s279_s11, 4  ;;  %s280_s1 = smov [#allocation7]   ;;  %s22_s12 = int_to_ptr.vmem [resolvable:$true] %s21_s12 }
   0x7   :  { %27 = dma.hbm_to_vmem [thread:$0]  %s20_s8, 256, %s22_s12, [#allocation4], %s277_s9, %s277_s9, %s278_s10  }
   0x8   :  { %s49_s16 = sshll.u32 %s280_s1, 4  ;;  %s50_s16 = int_to_ptr.vmem [resolvable:$true] %s49_s16 }
   0x9   :  { %55 = dma.hbm_to_vmem [thread:$0]  %s48_s15, 512, %s50_s16, [#allocation6], %s277_s9, %s277_s9, %s278_s10  }
   0xa   :  { %272 = dma.done.wait [#allocation4], 256  }
   0xb   :  { %273 = vsyncadd [#allocation4], 4294967040 }
   0xc   :  { %274 = dma.done.wait [#allocation6], 1024  }
   0xd   :  { %275 = vsyncadd [#allocation6], 4294966272  ;;  %v79_v0 = vld [vmem:[#allocation5 + $0x18] sm:$0xff]  ;;  %v78_v1 = vld [vmem:[#allocation5 + $0x10] sm:$0xff]  ;;  %vm88_vm0 = vcmask 261120   ;;  %v168_v29 = vstv %s360_s6  ;;  %vm171_vm1 = vcmask 7168  }
   0xe   :  { %184 = vmatpush.msra.mxu2 %v79_v0  ;;  %107 = vmatpush.msra.mxu0 %v79_v0  ;;  %v77_v2 = vld [vmem:[#allocation5 + $0x8] sm:$0xff]  ;;  %v83_v3 = vld [vmem:[#allocation7 + $0x18] sm:$0xff]  ;;  %v76_v4 = vld [vmem:[#allocation5] sm:$0xff] }
   0xf   :  { %142 = vmatpush.msra.mxu1 %v83_v3  ;;  %188 = vmatpush.msra.mxu3 %v83_v3  ;;  %v75_v5 = vld [vmem:[#allocation3 + $0x8] sm:$0xff]  ;;  %v74_v6 = vld [vmem:[#allocation3] sm:$0xff]  ;;  %v81_v8 = vld [vmem:[#allocation7 + $0x8] sm:$0xff] }
  0x10   :  { %185 = vmatpush.msra.mxu2 %v78_v1  ;;  %108 = vmatpush.msra.mxu0 %v78_v1  ;;  %v82_v7 = vld [vmem:[#allocation7 + $0x10] sm:$0xff]  ;;  %v80_v9 = vld [vmem:[#allocation7] sm:$0xff] }
  0x11   :  { %143 = vmatpush.msra.mxu1 %v82_v7  ;;  %189 = vmatpush.msra.mxu3 %v82_v7  ;;  %v197_v10 = vld [vmem:[%s356_s2] ss:$0 sm:$0xff] }
  0x12   :  { %186 = vmatpush.msra.mxu2 %v77_v2  ;;  %109 = vmatpush.msra.mxu0 %v77_v2  ;;  %v198_v17 = vld [vmem:[%s358_s4] ss:$0 sm:$0xff] }
  0x13   :  { %144 = vmatpush.msra.mxu1 %v81_v8  ;;  %190 = vmatpush.msra.mxu3 %v81_v8  ;;  %v199_v20 = vld [vmem:[%s359_s5] ss:$0 sm:$0xff] }
  0x14   :  { %187 = vmatpush.msra.mxu2 %v76_v4  ;;  %110 = vmatpush.msra.mxu0 %v76_v4 }
  0x15   :  { %181 = vmatmul.msk.f32.vlgmr.msra.gmra.mxu2 %vm88_vm0, %v75_v5  ;;  %180 = vmatmul.msk.f32.vlgmr.msra.gmra.mxu0 %vm88_vm0, %v74_v6 }
  0x16   :  { %145 = vmatpush.msra.mxu1 %v80_v9  ;;  %191 = vmatpush.msra.mxu3 %v80_v9 }
  0x92   :  { %v112_v11 = vpop.f32.mrf.mxu0 }
  0x93   :  { %v113_v12 = vadd.f32 %v197_v10, %v112_v11 }
  0x95   :  { %v118_v13 = vmax.f32 %v113_v12, 0.0 }
  0x97   :  { %182 = vmatmul.msk.f32.vlgmr.msra.gmra.mxu1 %vm88_vm0, %v118_v13 }
  0x98   :  { %v115_v14 = vpop.f32.mrf.mxu2 }
  0x99   :  { %v116_v15 = vadd.f32 %v197_v10, %v115_v14 }
  0x9b   :  { %v119_v16 = vmax.f32 %v116_v15, 0.0 }
  0x9d   :  { %183 = vmatmul.msk.f32.vlgmr.msra.gmra.mxu3 %vm88_vm0, %v119_v16 }
 0x114   :  { %v147_v18 = vpop.f32.mrf.mxu1 }
 0x115   :  { %v148_v19 = vadd.f32 %v198_v17, %v147_v18 }
 0x117   :  { %v153_v21 = vmax.f32 %v148_v19, 0.0 }
 0x119   :  { %v159_v22 = vmul.f32 %v199_v20, %v153_v21 }
 0x11b   :  { %v161_v23 = vsel %vm88_vm0, %v159_v22, 0.0 }
 0x11c   :  { %162 = vadd.xlane.f32.xlu0 %v161_v23 }
 0x120   :  { %v150_v24 = vpop.f32.mrf.mxu3 }
 0x121   :  { %v151_v25 = vadd.f32 %v198_v17, %v150_v24 }
 0x123   :  { %v154_v26 = vmax.f32 %v151_v25, 0.0 }
 0x125   :  { %v160_v27 = vmul.f32 %v199_v20, %v154_v26 }
 0x127   :  { %v164_v28 = vsel %vm88_vm0, %v160_v27, 0.0 }
 0x128   :  { %165 = vadd.xlane.f32.xlu0 %v164_v28 }
 0x18f   :  { %v163_v30 = vpop.xlane.xlu0 %162 }
 0x190   :  { %v169_v31 = vadd.f32 %v168_v29, %v163_v30 }
 0x192   :  { %172 = vst.msk [vmem:[%s361_s7] sm:$0xff] %vm171_vm1, %v169_v31 }
 0x19b   :  { %v166_v32 = vpop.xlane.xlu0 %165 }
 0x19c   :  { %v170_v33 = vadd.f32 %v168_v29, %v166_v32 }
 0x19e   :  { %173 = vst.msk [vmem:[%s361_s7 + $0x8] sm:$0xff] %vm171_vm1, %v170_v33 }
 0x19f   :  { %178 = vsyncpa [#allocation4], 1 }
 0x1a0   :  { %179 = vsyncpa [#allocation6], 1 }

</bundles_post_ra>
